<compile_context>
chip_gen: v5e
topology: v5e:2x2
jax: 0.10.0
libtpu: 0.0.40
codegen_flags: <defaults>
</compile_context>

<pallas_src>
import jax
import jax.numpy as jnp
from jax.experimental import pallas as pl
from jax.experimental.pallas import tpu as pltpu


def _fused_linear_add_relu_kernel(x1_ref, w_ref, b_ref, x2_ref, o_ref):
    # Per-row dot product on the VPU/XLU: (8,128) * (1,128) -> sum lanes -> (8,1).
    # Zero padding in the feature dim contributes nothing to the sum.
    t1 = jnp.sum(x1_ref[...] * w_ref[...], axis=-1, keepdims=True) + b_ref[0, 0]
    # Broadcast (8,1) + (8,128), relu, store lane-dense.
    o_ref[...] = jnp.maximum(t1 + x2_ref[...], 0.0)


def fused_linear_add_relu(x1, weight, bias, x2):
    """relu(x1 @ weight.T + bias + x2) computed inside one Pallas kernel.

    x1: (batch, in_features)  weight: (1, in_features)  bias: (1,)  x2: (batch, n)
    """
    batch, in_features = x1.shape
    n = x2.shape[1]

    # Pad to vreg-aligned shapes: sublanes -> multiple of 8, lanes -> multiple of 128.
    bp = ((batch + 7) // 8) * 8
    kp = ((in_features + 127) // 128) * 128
    np_ = ((n + 127) // 128) * 128

    x1p = jnp.zeros((bp, kp), jnp.float32).at[:batch, :in_features].set(x1)
    wp = jnp.zeros((1, kp), jnp.float32).at[0, :in_features].set(weight[0])
    x2p = jnp.zeros((bp, np_), jnp.float32).at[:batch, :n].set(x2)
    b2 = bias.reshape(1, 1).astype(jnp.float32)

    vmem = pl.BlockSpec(memory_space=pltpu.MemorySpace.VMEM)
    smem = pl.BlockSpec(memory_space=pltpu.MemorySpace.SMEM)

    out_padded = pl.pallas_call(
        _fused_linear_add_relu_kernel,
        out_shape=jax.ShapeDtypeStruct((bp, np_), jnp.float32),
        in_specs=[vmem, vmem, smem, vmem],
        out_specs=vmem,
        cost_estimate=pl.CostEstimate(
            flops=2 * bp * kp + 2 * bp * np_,
            transcendentals=0,
            bytes_accessed=4 * (bp * kp + kp + 1 + 2 * bp * np_),
        ),
    )(x1p, wp, b2, x2p)

    # Slice the valid region back out (padding discarded).
    return out_padded[:batch, :n]


if __name__ == "__main__":
    out_channel = 1
    in_features = 10
    batch = 5
    n = 8

    key = jax.random.PRNGKey(0)
    k_w, k_b, k_x1, k_x2 = jax.random.split(key, 4)

    # Deterministic parameter init (mimicking torch.nn.Linear uniform init).
    bound = 1.0 / (in_features ** 0.5)
    weight = jax.random.uniform(
        k_w, (out_channel, in_features), jnp.float32, -bound, bound
    )
    bias = jax.random.uniform(k_b, (out_channel,), jnp.float32, -bound, bound)

    # Inputs matching the module: x1 is (5, 10) so Linear(10, 1) applies, x2 is (5, 8).
    x1 = jax.random.normal(k_x1, (batch, in_features), jnp.float32)
    x2 = jax.random.normal(k_x2, (batch, n), jnp.float32)

    out = fused_linear_add_relu(x1, weight, bias, x2)
    out = jax.block_until_ready(out)

    # Reference check in plain JAX.
    ref = jnp.maximum(x1 @ weight.T + bias.reshape(1, out_channel) + x2, 0.0)
    assert out.shape == (batch, n)
    assert jnp.allclose(out, ref, atol=1e-5, rtol=1e-5)

    print("KERNEL_OK")
</pallas_src>

<mosaic_0001>
module attributes {stable_mosaic.version = 11 : i64} {
  func.func @_fused_linear_add_relu_kernel(%arg0: memref<8x128xf32, #tpu.memory_space<vmem>>, %arg1: memref<1x128xf32, #tpu.memory_space<vmem>>, %arg2: memref<1x1xf32, #tpu.memory_space<smem>>, %arg3: memref<8x128xf32, #tpu.memory_space<vmem>>, %arg4: memref<8x128xf32, #tpu.memory_space<vmem>>) attributes {dimension_semantics = [], scalar_prefetch = 0 : i64, scratch_operands = 0 : i64, tpu.core_type = #tpu.core_type<tc>} {
    %c0 = arith.constant 0 : index
    %c0_0 = arith.constant 0 : index
    %0 = vector.load %arg0[%c0, %c0_0] : memref<8x128xf32, #tpu.memory_space<vmem>>, vector<8x128xf32>
    %c0_1 = arith.constant 0 : index
    %c0_2 = arith.constant 0 : index
    %1 = vector.load %arg1[%c0_1, %c0_2] : memref<1x128xf32, #tpu.memory_space<vmem>>, vector<1x128xf32>
    %2 = vector.broadcast %1 : vector<1x128xf32> to vector<8x128xf32>
    %3 = arith.mulf %0, %2 : vector<8x128xf32>
    %cst = arith.constant dense<0.000000e+00> : vector<8xf32>
    %4 = vector.multi_reduction <add>, %3, %cst [1] : vector<8x128xf32> to vector<8xf32>
    %5 = vector.shape_cast %4 : vector<8xf32> to vector<8x1xf32>
    %c0_3 = arith.constant 0 : index
    %c0_4 = arith.constant 0 : index
    %6 = memref.load %arg2[%c0_3, %c0_4] : memref<1x1xf32, #tpu.memory_space<smem>>
    %7 = vector.broadcast %6 : f32 to vector<8x1xf32>
    %8 = arith.addf %5, %7 : vector<8x1xf32>
    %c0_5 = arith.constant 0 : index
    %c0_6 = arith.constant 0 : index
    %9 = vector.load %arg3[%c0_5, %c0_6] : memref<8x128xf32, #tpu.memory_space<vmem>>, vector<8x128xf32>
    %10 = vector.broadcast %8 : vector<8x1xf32> to vector<8x128xf32>
    %11 = arith.addf %10, %9 : vector<8x128xf32>
    %cst_7 = arith.constant 0.000000e+00 : f32
    %12 = vector.broadcast %cst_7 : f32 to vector<8x128xf32>
    %13 = arith.maximumf %11, %12 : vector<8x128xf32>
    %c0_8 = arith.constant 0 : index
    %c0_9 = arith.constant 0 : index
    %14 = vector.load %arg4[%c0_8, %c0_9] : memref<8x128xf32, #tpu.memory_space<vmem>>, vector<8x128xf32>
    tpu.vector_store %arg4[%c0_8, %c0_9], %13 {strides = array<i32>} : memref<8x128xf32, #tpu.memory_space<vmem>>, vector<8x128xf32>,
    return
  }
}

</mosaic_0001>

<bundles_post_ra>
// kernel: tpu_custom_call.1
= control target key start
LH: loop header
LB: loop body
LE: loop exit
PB: predicated region body
PF: predicated region fallthrough
CT: control target
= control target key end

     0   :  { %10 = vsyncpa [#allocation4], 0  ;;  %s205_s0 = inlined_call_operand.hbm [shape: f32[8,128], index: 0, kind: input, shape index: {}]   ;;  %s206_s1 = inlined_call_operand.vmem [shape: f32[1,128], index: 1, kind: input, shape index: {}]   ;;  %s207_s2 = inlined_call_operand.<no memory space> [shape: f32[1,1], index: 2, kind: input, shape index: {}]   ;;  %s208_s3 = inlined_call_operand.hbm [shape: f32[8,128], index: 3, kind: input, shape index: {}]   ;;  %s209_s4 = inlined_call_operand.hbm [shape: f32[8,128], index: 4, kind: output, shape index: {}]  }
   0x1   :  { %11 = vsyncpa [#allocation7], 0 }
   0x2   :  { %12 = vsyncpa [#allocation5], 0  ;;  %s18_s17 = sshll.u32 %s205_s0, 4  ;;  %s162_s18 = smov [#allocation3]   ;;  %s19_s17 = int_to_ptr.hbm [resolvable:$true] %s18_s17 }
   0x3   :  { %s20_s19 = sshll.u32 %s162_s18, 4  ;;  %s33_s22 = sshll.u32 %s208_s3, 4  ;;  %s21_s19 = int_to_ptr.vmem [resolvable:$true] %s20_s19  ;;  %s34_s22 = int_to_ptr.hbm [resolvable:$true] %s33_s22 }
   0x4   :  { %23 = dma.hbm_to_vmem [thread:$0]  %s19_s17, 128, %s21_s19, [#allocation4]  }
   0x5   :  { %s163_s23 = smov [#allocation6]  }
   0x6   :  { %s35_s24 = sshll.u32 %s163_s23, 4  ;;  %s36_s24 = int_to_ptr.vmem [resolvable:$true] %s35_s24 }
   0x7   :  { %38 = dma.hbm_to_vmem [thread:$0]  %s34_s22, 128, %s36_s24, [#allocation7]  }
   0x8   :  { %156 = dma.done.wait [#allocation4], 128  }
   0x9   :  { %157 = vsyncadd [#allocation4], 4294967168 }
   0xa   :  { %158 = dma.done.wait [#allocation7], 128  }
   0xb   :  { %159 = vsyncadd [#allocation7], 4294967168  ;;  %v47_v0 = vld [vmem:[#allocation3] sm:$0xff]  ;;  %v56_v3 = vstv %s207_s2  ;;  %v58_v5 = vld [vmem:[#allocation6] sm:$0xff]  ;;  %s164_s3 = smov [#allocation8]   ;;  %s69_s5 = sshll.u32 %s209_s4, 4  ;;  %s70_s5 = int_to_ptr.hbm [resolvable:$true] %s69_s5 }
   0xc   :  { %v83_v1 = vld [vmem:[%s206_s1] ss:$0 sm:$0xff]  ;;  %s67_s28 = sshll.u32 %s164_s3, 4  ;;  %s68_s28 = int_to_ptr.vmem [resolvable:$true] %s67_s28 }
   0xd   :  { %v52_v2 = vmul.f32 %v83_v1, %v47_v0 }
   0xf   :  { %53 = vadd.xlane.f32.xlu0 %v52_v2 }
  0x82   :  { %v54_v4 = vpop.xlane.xlu0 %53 }
  0x83   :  { %v57_v6 = vadd.f32 %v56_v3, %v54_v4 }
  0x85   :  { %v59_v7 = vadd.f32 %v58_v5, %v57_v6 }
  0x87   :  { %v60_v8 = vmax.f32 %v59_v7, 0.0 }
  0x89   :  { %61 = vst [vmem:[#allocation8] sm:$0xff] %v60_v8 }
  0x8a   :  { %72 = dma.vmem_to_hbm [thread:$0]  %s68_s28, 128, %s70_s5, [#allocation5]  }
  0x8b   :  { %160 = dma.done.wait [#allocation5], 128  }
  0x8c   :  { %161 = vsyncadd [#allocation5], 4294967168 }
  0x8d   :  { %77 = vsyncpa [#allocation4], 1 }
  0x8e   :  { %78 = vsyncpa [#allocation7], 1 }
  0x8f   :  { %79 = vsyncpa [#allocation5], 1 }

</bundles_post_ra>
